<compile_context>
chip_gen: v7x
topology: tpu7x:2x2x1
jax: 0.10.0
libtpu: 0.0.40
codegen_flags: <defaults>
</compile_context>

<pallas_src>
import jax
import jax.numpy as jnp
from jax import lax
from jax.experimental import pallas as pl
from jax.experimental.pallas import tpu as pltpu


_SQUEEZED = pl.Squeezed() if hasattr(pl, "Squeezed") else None


def _round_up(x, m):
    return ((x + m - 1) // m) * m


# ---------------------------------------------------------------------------
# Kernel 1: fnet_aligner == 1x1 conv == matmul over channels + bias (MXU)
# ---------------------------------------------------------------------------
def _aligner_kernel(x_ref, w_ref, b_ref, o_ref):
    o_ref[...] = (
        jnp.dot(x_ref[...], w_ref[...], preferred_element_type=jnp.float32)
        + b_ref[...]
    )


def conv1x1(x_flat, w, b, *, tm=512):
    """x_flat: (N, Cin) f32, w: (Cin, Cout), b: (Cout,) -> (N, Cout) f32."""
    n, cin = x_flat.shape
    cout = w.shape[1]
    tm = min(tm, _round_up(n, 8))
    n_pad = _round_up(n, tm)
    if n_pad != n:                       # tail rows: pad, then slice off
        x_flat = jnp.pad(x_flat, ((0, n_pad - n), (0, 0)))
    out = pl.pallas_call(
        _aligner_kernel,
        out_shape=jax.ShapeDtypeStruct((n_pad, cout), jnp.float32),
        grid=(n_pad // tm,),
        in_specs=[
            pl.BlockSpec((tm, cin), lambda i: (i, 0)),
            pl.BlockSpec((cin, cout), lambda i: (0, 0)),
            pl.BlockSpec((1, cout), lambda i: (0, 0)),
        ],
        out_specs=pl.BlockSpec((tm, cout), lambda i: (i, 0)),
        compiler_params=pltpu.CompilerParams(dimension_semantics=("parallel",)),
    )(x_flat.astype(jnp.bfloat16), w.astype(jnp.bfloat16),
      b.reshape(1, cout).astype(jnp.float32))
    return out[:n]


# ---------------------------------------------------------------------------
# Kernel 2: all-pairs cost volume (target-major layout)
# ---------------------------------------------------------------------------
def _cost_volume_kernel(f2_ref, f1t_ref, o_ref):
    # canonical (M, K) x (K, N) MXU matmul, f32 accumulation
    o_ref[...] = jnp.dot(f2_ref[...], f1t_ref[...],
                         preferred_element_type=jnp.float32)


def cost_volume_t(f1, f2):
    """f1, f2: (bs, hw, C) f32 aligned features.

    Returns cost[b, j, i] = <f2[b, j], f1[b, i]> / sqrt(C) (target-major) —
    the transpose of the torch cost volume, which is exactly the layout the
    lookup kernel wants (query index ends up on the lane axis).
    """
    bs, hw, c = f1.shape
    inv_sqrt = 1.0 / float(c) ** 0.5
    # Fold 1/sqrt(C) into f1 and pre-transpose it to (C, hw) -> no in-kernel
    # transpose; bf16 MXU operands, f32 accumulation.
    f1t = (f1 * inv_sqrt).transpose(0, 2, 1).astype(jnp.bfloat16)   # (bs, C, hw)
    f2b = f2.astype(jnp.bfloat16)                                   # (bs, hw, C)
    tm_hw = next((t for t in (512, 256, 128) if hw % t == 0), hw)
    # Double-buffered block footprint + headroom (keeps v7x's 64 MiB VMEM safe
    # at realistic RAFT resolutions while staying portable to v5e/v6e).
    blk_bytes = tm_hw * c * 2 + c * hw * 2 + tm_hw * hw * 4
    vmem_limit = int(2 * blk_bytes + 8 * 1024 * 1024)
    return pl.pallas_call(
        _cost_volume_kernel,
        out_shape=jax.ShapeDtypeStruct((bs, hw, hw), jnp.float32),
        grid=(bs, hw // tm_hw),
        in_specs=[
            pl.BlockSpec((_SQUEEZED, tm_hw, c), lambda b, m: (b, m, 0)),
            pl.BlockSpec((_SQUEEZED, c, hw), lambda b, m: (b, 0, 0)),
        ],
        out_specs=pl.BlockSpec((_SQUEEZED, tm_hw, hw), lambda b, m: (b, m, 0)),
        compiler_params=pltpu.CompilerParams(
            dimension_semantics=("parallel", "parallel"),
            vmem_limit_bytes=vmem_limit,
        ),
    )(f2b, f1t)


# ---------------------------------------------------------------------------
# Kernel 3: fused correlation lookup over ALL pyramid levels.
# Exact torch.grid_sample semantics (zeros padding, align_corners=True, pixel
# coordinates pass through unchanged), expressed as one-hot interpolation
# contractions with the query dimension on the lane axis.
# ---------------------------------------------------------------------------
def _make_lookup_kernel(radius, level_shapes, q_block):
    kk = 2 * radius + 1
    num_levels = len(level_shapes)

    def kernel(*refs):
        coords_ref = refs[0]
        cv_refs = refs[1:1 + num_levels]
        o_ref = refs[1 + num_levels]

        cxy = coords_ref[...]             # (2, Q) f32, Q on the lane axis
        cx = cxy[0:1, :]                  # (1, Q) coords channel 0 -> x (width)
        cy = cxy[1:2, :]                  # (1, Q) coords channel 1 -> y (height)

        for lvl, (hl, wl) in enumerate(level_shapes):
            inv_scale = 1.0 / float(2 ** lvl)
            px = cx * inv_scale           # (1, Q)
            py = cy * inv_scale           # (1, Q)
            cv = cv_refs[lvl][...]        # (hl, wl, Q)
            base = lvl * kk * kk

            # Row (y) weights for all 2r+1 offsets: wy[b, y, q].  One-hot over
            # the row index => out-of-bounds neighbors contribute 0 (zeros
            # padding of grid_sample).
            yi = lax.broadcasted_iota(jnp.float32, (hl, q_block), 0)
            wy_parts = []
            for b in range(kk):
                sy = py + float(b - radius)                 # (1, Q)
                y0 = jnp.floor(sy)
                fy = sy - y0
                wyb = (jnp.where(yi == y0, 1.0 - fy, 0.0)
                       + jnp.where(yi == y0 + 1.0, fy, 0.0))  # (hl, Q)
                wy_parts.append(wyb[None])                  # (1, hl, Q)
            wy = jnp.concatenate(wy_parts, axis=0)          # (kk, hl, Q)

            # Column (x) weights + the two tiny contractions, per offset a.
            xi = lax.broadcasted_iota(jnp.float32, (wl, q_block), 0)
            for a in range(kk):
                sx = px + float(a - radius)                 # (1, Q)
                x0 = jnp.floor(sx)
                fx = sx - x0
                wxa = (jnp.where(xi == x0, 1.0 - fx, 0.0)
                       + jnp.where(xi == x0 + 1.0, fx, 0.0))  # (wl, Q)
                # t_a[y, q]  = sum_x cv[y, x, q] * wxa[x, q]
                t_a = jnp.sum(cv * wxa[None, :, :], axis=1)   # (hl, Q)
                # rows[b, q] = sum_y wy[b, y, q] * t_a[y, q]
                rows = jnp.sum(wy * t_a[None, :, :], axis=1)  # (kk, Q)
                # Channel order matches torch: c = lvl*K*K + a*K + b, where a
                # is the offset added to coords channel 0 (grid_sample x) and
                # b the offset added to channel 1 (grid_sample y).
                o_ref[base + a * kk:base + (a + 1) * kk, :] = rows

    return kernel


def correlation_lookup(coords_t, pyramid, *, radius):
    """coords_t: (2, N) pixel coords; pyramid: list of (H_l, W_l, N) f32.

    Returns (num_levels*(2r+1)^2, N) f32, lane-dense (queries on lanes).
    """
    num_levels = len(pyramid)
    kk = 2 * radius + 1
    n = coords_t.shape[1]
    q_block = 256 if n >= 256 else 128
    n_pad = _round_up(n, q_block)
    if n_pad != n:                        # tail queries: pad, then slice off
        coords_t = jnp.pad(coords_t, ((0, 0), (0, n_pad - n)))
        pyramid = [jnp.pad(cv, ((0, 0), (0, 0), (0, n_pad - n)))
                   for cv in pyramid]
    level_shapes = tuple((int(cv.shape[0]), int(cv.shape[1])) for cv in pyramid)
    out_ch = num_levels * kk * kk
    kernel = _make_lookup_kernel(radius, level_shapes, q_block)
    in_specs = [pl.BlockSpec((2, q_block), lambda i: (0, i))]
    in_specs += [pl.BlockSpec((hl, wl, q_block), lambda i: (0, 0, i))
                 for (hl, wl) in level_shapes]
    out = pl.pallas_call(
        kernel,
        out_shape=jax.ShapeDtypeStruct((out_ch, n_pad), jnp.float32),
        grid=(n_pad // q_block,),
        in_specs=in_specs,
        out_specs=pl.BlockSpec((out_ch, q_block), lambda i: (0, i)),
        compiler_params=pltpu.CompilerParams(dimension_semantics=("parallel",)),
    )(coords_t, *pyramid)
    return out[:, :n]


# ---------------------------------------------------------------------------
# Module
# ---------------------------------------------------------------------------
class Correlation2D:
    def __init__(self, num_levels=4, radius=4, key=None):
        self.num_levels = num_levels
        self.radius = radius
        if key is None:
            key = jax.random.PRNGKey(0)
        kw, kb = jax.random.split(key)
        # nn.Conv2d(128, 256, kernel_size=1): weight stored as (Cin, Cout)
        self.aligner_w = (0.02 * jax.random.normal(kw, (128, 256))).astype(jnp.float32)
        self.aligner_b = (0.01 * jax.random.normal(kb, (256,))).astype(jnp.float32)
        self.cost_volume_pyramid = None

    def build_cost_volume_pyramid(self, fmap1, fmap2):
        bs, c, h, w = fmap1.shape
        n = bs * h * w
        # Single aligner launch: stack both feature maps along the row axis.
        x = jnp.concatenate([fmap1, fmap2], axis=0).astype(jnp.float32)
        x = x.transpose(0, 2, 3, 1).reshape(2 * n, c)        # channels-last rows
        aligned = conv1x1(x, self.aligner_w, self.aligner_b)  # (2n, 256) f32
        dim = aligned.shape[-1]
        f1 = aligned[:n].reshape(bs, h * w, dim)
        f2 = aligned[n:].reshape(bs, h * w, dim)
        # cost[b, j, i] = <f2[b, j], f1[b, i]> / sqrt(dim)   (target-major)
        cvT = cost_volume_t(f1, f2)                           # (bs, hw_t, hw_q)
        # -> (h, w, N) with the query index nq = b*hw + i on the last axis.
        cv = cvT.transpose(1, 0, 2).reshape(h, w, n)
        pyramid = [cv]
        for _ in range(self.num_levels - 1):
            hh, ww, nn = cv.shape
            # avg_pool2d(2, stride=2) over the target spatial dims
            # (requires even H_l, W_l at every level, same as the reference).
            cv = cv.reshape(hh // 2, 2, ww // 2, 2, nn).mean(axis=(1, 3))
            pyramid.append(cv)
        self.cost_volume_pyramid = pyramid

    def forward(self, coords):
        bs, _, h, w = coords.shape
        n = bs * h * w
        kk = 2 * self.radius + 1
        coords_t = coords.astype(jnp.float32).transpose(1, 0, 2, 3).reshape(2, n)
        out = correlation_lookup(coords_t, self.cost_volume_pyramid,
                                 radius=self.radius)          # (L*K*K, N)
        out = out.reshape(self.num_levels * kk * kk, bs, h, w)
        return out.transpose(1, 0, 2, 3)                       # (bs, L*K*K, h, w)


# ---------------------------------------------------------------------------
# Pure-JAX gather reference for the lookup (same pyramid layout) — used only
# as a runtime self-check in __main__.
# ---------------------------------------------------------------------------
def _reference_lookup(coords_t, pyramid, radius):
    kk = 2 * radius + 1
    outs = []
    for lvl, cv in enumerate(pyramid):
        hl, wl, n = cv.shape
        d = jnp.arange(kk, dtype=jnp.float32) - radius
        sx = coords_t[0][None, :] / (2.0 ** lvl) + d[:, None]   # (kk_a, N)
        sy = coords_t[1][None, :] / (2.0 ** lvl) + d[:, None]   # (kk_b, N)
        x0 = jnp.floor(sx); fx = sx - x0
        y0 = jnp.floor(sy); fy = sy - y0
        cv_flat = cv.reshape(hl * wl, n)

        def corner(yi, xi, wgt):
            valid = (yi >= 0) & (yi < hl) & (xi >= 0) & (xi < wl)
            yc = jnp.clip(yi, 0, hl - 1).astype(jnp.int32)
            xc = jnp.clip(xi, 0, wl - 1).astype(jnp.int32)
            idx = jnp.broadcast_to(yc * wl + xc, (kk, kk, n)).reshape(kk * kk, n)
            val = jnp.take_along_axis(cv_flat, idx, axis=0).reshape(kk, kk, n)
            return jnp.where(valid, val * wgt, 0.0)

        X0 = x0[:, None, :]; FX = fx[:, None, :]                 # offset index a
        Y0 = y0[None, :, :]; FY = fy[None, :, :]                 # offset index b
        out = (corner(Y0, X0, (1 - FX) * (1 - FY))
               + corner(Y0, X0 + 1, FX * (1 - FY))
               + corner(Y0 + 1, X0, (1 - FX) * FY)
               + corner(Y0 + 1, X0 + 1, FX * FY))                # (kk, kk, N)
        outs.append(out.reshape(kk * kk, n))
    return jnp.concatenate(outs, axis=0)


if __name__ == "__main__":
    key = jax.random.PRNGKey(0)
    k1, k2, k3, kparams = jax.random.split(key, 4)
    bs, c_in, h, w = 2, 128, 16, 16

    fmap1 = jax.random.normal(k1, (bs, c_in, h, w), dtype=jnp.float32)
    fmap2 = jax.random.normal(k2, (bs, c_in, h, w), dtype=jnp.float32)

    # pixel-coordinate grid (x, y) + small random flow, NCHW like RAFT coords
    ys, xs = jnp.meshgrid(
        jnp.arange(h, dtype=jnp.float32),
        jnp.arange(w, dtype=jnp.float32),
        indexing="ij",
    )
    base = jnp.stack([xs, ys], axis=0)[None]                 # (1, 2, h, w)
    coords = base + 0.5 * jax.random.normal(k3, (bs, 2, h, w), dtype=jnp.float32)

    model = Correlation2D(num_levels=4, radius=4, key=kparams)
    model.build_cost_volume_pyramid(fmap1, fmap2)
    out = model.forward(coords)
    out = jax.block_until_ready(out)

    kk = 2 * model.radius + 1
    expected = (bs, model.num_levels * kk * kk, h, w)
    assert out.shape == expected, (out.shape, expected)
    assert bool(jnp.all(jnp.isfinite(out)))

    # Cross-check the Pallas lookup against a pure-JAX gather reference that
    # samples the SAME (f32) cost-volume pyramid.
    coords_t = coords.astype(jnp.float32).transpose(1, 0, 2, 3).reshape(2, bs * h * w)
    ref = _reference_lookup(coords_t, model.cost_volume_pyramid, model.radius)
    ref = ref.reshape(model.num_levels * kk * kk, bs, h, w).transpose(1, 0, 2, 3)
    assert bool(jnp.allclose(out, ref, atol=1e-3, rtol=1e-3)), float(
        jnp.max(jnp.abs(out - ref)))

    print("KERNEL_OK")
</pallas_src>

<mosaic_0001>
module attributes {stable_mosaic.version = 11 : i64} {
  func.func @_aligner_kernel(%arg0: i32, %arg1: memref<512x128xbf16, #tpu.memory_space<vmem>>, %arg2: memref<128x256xbf16, #tpu.memory_space<vmem>>, %arg3: memref<1x256xf32, #tpu.memory_space<vmem>>, %arg4: memref<512x256xf32, #tpu.memory_space<vmem>>) attributes {dimension_semantics = [#tpu.dimension_semantics<parallel>], iteration_bounds = array<i64: 2>, scalar_prefetch = 0 : i64, scratch_operands = 0 : i64, tpu.core_type = #tpu.core_type<tc>, window_params = [{transform_indices = @transform_0, window_bounds = array<i64: 512, 128>}, {pipeline_mode = #tpu.pipeline_mode<synchronous>, transform_indices = @transform_1, window_bounds = array<i64: 128, 256>}, {pipeline_mode = #tpu.pipeline_mode<synchronous>, transform_indices = @transform_2, window_bounds = array<i64: 1, 256>}, {transform_indices = @transform_3, window_bounds = array<i64: 512, 256>}]} {
    %c0 = arith.constant 0 : index
    %c0_0 = arith.constant 0 : index
    %0 = vector.load %arg1[%c0, %c0_0] : memref<512x128xbf16, #tpu.memory_space<vmem>>, vector<512x128xbf16>
    %c0_1 = arith.constant 0 : index
    %c0_2 = arith.constant 0 : index
    %1 = vector.load %arg2[%c0_1, %c0_2] : memref<128x256xbf16, #tpu.memory_space<vmem>>, vector<128x256xbf16>
    %cst = arith.constant dense<0.000000e+00> : vector<512x256xf32>
    %2 = tpu.matmul %0, %1, %cst {dimension_numbers = #tpu.dot_dimension_numbers<[1], [0], [0], [1], [0, 0, 1, 1], [], []>} : vector<512x128xbf16>, vector<128x256xbf16>, vector<512x256xf32> -> vector<512x256xf32>
    %c0_3 = arith.constant 0 : index
    %c0_4 = arith.constant 0 : index
    %3 = vector.load %arg3[%c0_3, %c0_4] : memref<1x256xf32, #tpu.memory_space<vmem>>, vector<1x256xf32>
    %4 = vector.broadcast %3 : vector<1x256xf32> to vector<512x256xf32>
    %5 = arith.addf %2, %4 : vector<512x256xf32>
    %c0_5 = arith.constant 0 : index
    %c0_6 = arith.constant 0 : index
    %6 = vector.load %arg4[%c0_5, %c0_6] : memref<512x256xf32, #tpu.memory_space<vmem>>, vector<512x256xf32>
    tpu.vector_store %arg4[%c0_5, %c0_6], %5 {strides = array<i32>} : memref<512x256xf32, #tpu.memory_space<vmem>>, vector<512x256xf32>,
    return
  }
  func.func @transform_0(%arg0: i32) -> (i32, i32) {
    %c0_i32 = arith.constant 0 : i32
    %c0_i32_0 = arith.constant 0 : i32
    return %arg0, %c0_i32 : i32, i32
  }
  func.func @transform_1(%arg0: i32) -> (i32, i32) {
    %c0_i32 = arith.constant 0 : i32
    %c0_i32_0 = arith.constant 0 : i32
    %c0_i32_1 = arith.constant 0 : i32
    return %c0_i32, %c0_i32_0 : i32, i32
  }
  func.func @transform_2(%arg0: i32) -> (i32, i32) {
    %c0_i32 = arith.constant 0 : i32
    %c0_i32_0 = arith.constant 0 : i32
    %c0_i32_1 = arith.constant 0 : i32
    return %c0_i32, %c0_i32_0 : i32, i32
  }
  func.func @transform_3(%arg0: i32) -> (i32, i32) {
    %c0_i32 = arith.constant 0 : i32
    %c0_i32_0 = arith.constant 0 : i32
    return %arg0, %c0_i32 : i32, i32
  }
}

</mosaic_0001>

<bundles_post_ra>
// kernel: tpu_custom_call.1
= control target key start
LH: loop header
LB: loop body
LE: loop exit
PB: predicated region body
PF: predicated region fallthrough
CT: control target
= control target key end

     0   :  { %8 = vsyncpa [#allocation3], 0  ;;  %s2048_s0 = inlined_call_operand.hbm [shape: bf16[1024,128], index: 0, kind: input, shape index: {}]   ;;  %s2049_s1 = inlined_call_operand.hbm [shape: bf16[128,256], index: 1, kind: input, shape index: {}]   ;;  %s2050_s2 = inlined_call_operand.vmem [shape: f32[1,256], index: 2, kind: input, shape index: {}]   ;;  %s2051_s3 = inlined_call_operand.hbm [shape: f32[1024,256], index: 3, kind: output, shape index: {}]  }
   0x1   :  { %10 = vsyncpa [#allocation3 + $0x1], 0 }
   0x2   :  { %11 = vsyncpa [#allocation6], 0 }
   0x3   :  { %12 = vsyncpa [#allocation4], 0 }
   0x4   :  { %14 = vsyncpa [#allocation4 + $0x1], 0  ;;  %s1514_s12 = smov 0   ;;  %s1516_s13 = smov 0  }
   0x5   :  { %s1518_s14 = smov 0   ;;  %s1520_s15 = smov 0  }
   0x6 LB: > { %s1535_s16 = sadd.s32 4294967295, %s1482_s15   ;;  %s1150_s17 = sadd.s32 4294967294, %s1482_s15   ;;  %s1482_s15 = sphi %s1520_s15, %s2071_s15   ;;  %s1478_s14 = sphi %s1518_s14, %s2070_s14   ;;  %s1474_s13 = sphi %s1516_s13, %s2069_s13   ;;  %s1470_s12 = sphi %s1514_s12, %s2068_s12  }
   0x7   : > { %p40_p0 = scmp.ne.s32.totalorder %s1474_s13, %s1470_s12  ;;  %p2052_p1 = scmp.eq.s32.totalorder %s1535_s16, 0 }
   0x8   : > { %p112_p3 = scmp.eq.s32.totalorder %s1150_s17, 1  ;;  %p1151_p5 = scmp.ge.s32.totalorder %s1482_s15, 1 }
   0x9   : > { %p1544_p4 = por %p2052_p1, %p40_p0  ;;  %p119_p7 = scmp.lt.s32.totalorder %s1482_s15, 3 }
   0xa   : > { %p1549_p6 = por %p112_p3, %p40_p0  ;;  %s1484_s21 = smov [#allocation5]  }
   0xb   : > { %s2055_s18 = scalar_select %p1544_p4, 1, 0 }
   0xc   : > { %s2056_s19 = scalar_select %p1549_p6, 1, 0 }
   0xd   : > { %p1554_p8 = pnand %p1151_p5, %p119_p7  ;;  %s131_s22 = sshll.u32 %s1484_s21, 4  ;;  %s1558_s22 = int_to_ptr.vmem [resolvable:$true] %s131_s22 }
   0xe   : > { %s1570_s24 = sadd.s32 1, %s1482_s15   ;;  %s27_s25 = sadd.s32 1, %s1478_s14 }
   0xf   : > { %s2057_s20 = scalar_select %p1554_p8, 1, 0 }
  0x10   : > { %p1242_p9 = pneg %p1554_p8  ;;  %s24_s26 = ssub.s32 %s1482_s15, %s1570_s24 }
  0x11   : > { %s1354_s29 = scalar_lea.hbm %s2049_s1, 2048 }
  0x12   : > { %p1565_p11 = pnand %p1242_p9, %p2052_p1  ;;  %p1355_p12 = scmp.ne.s32.totalorder %s2049_s1, %s1354_s29 }
  0x13   : > { %p1361_p5 = scmp.lt.u32.totalorder %s1354_s29, %s2049_s1 }
  0x14   : > { %p1356_p13 = pneg %p1565_p11 }
  0x16   : > { %p1357_p0 = pnand %p1356_p13, %p1355_p12 }
  0x18   : > { %p1358_p3 = pneg %p1357_p0 }
  0x1a   : > { %p1363_p7 = pnand %p1361_p5, %p1358_p3 }
  0x1c   : > { %1366 = shalt.err (!%p1363_p7)
}
  0x1d   : > { %s1367_s7 = scalar_lea.vmem %s1558_s22, 2048  ;;  %p1375_p2 = scmp.lt.s32.totalorder %s1558_s22, %s1558_s22 }
  0x1e   : > { %p1368_p9 = scmp.ne.s32.totalorder %s1558_s22, %s1367_s7  ;;  %p1376_p6 = scmp.lt.s32.totalorder %s1367_s7, %s1367_s7 }
  0x20   : > { %p1370_p10 = pnand %p1368_p9, %p1356_p13  ;;  %p1377_p4 = por %p1376_p6, %p1375_p2 }
  0x22   : > { %p1371_p1 = pneg %p1370_p10 }
  0x24   : > { %p1378_p8 = pnand %p1377_p4, %p1371_p1 }
  0x26   : > { %1381 = shalt.err (!%p1378_p8)
}
  0x27   : > { %s1485_s8 = smov 128   ;;  %s1486_s9 = smov 8  }
  0x28   : > { %1245 = dma.hbm_to_vmem [thread:$0]  (!%p1565_p11), %s2049_s1, 2048, %s1558_s22, [#allocation6], %s1485_s8, %s1485_s8, %s1486_s9  }
  0x29   : > { %p25_p2 = scmp.eq.s32.totalorder %s24_s26, 0  ;;  %p34_p1 = scmp.ne.s32.totalorder %s1478_s14, %s1474_s13 }
  0x2a   : > { %p35_p4 = scmp.eq.s32.totalorder %s1482_s15, 0  ;;  %p1255_p6 = scmp.lt.s32.totalorder %s1482_s15, 2 }
  0x2b   : > { %s1601_s17 = scalar_select %p25_p2, %s1478_s14, %s27_s25  }
  0x2c   : > { %p36_p8 = por %p35_p4, %p34_p1  ;;  %p2059_p10 = scmp.eq.s32.totalorder %s1535_s16, 1 }
  0x2d   : > { %s148_s27 = sand.u32 1, %s1478_s14   ;;  %s1215_s28 = sshll.u32 %s1482_s15, 12 }
  0x2e   : > { %p1605_p12 = por %p2059_p10, %p34_p1  ;;  %s1154_s29 = sshll.u32 %s148_s27, 8 }
  0x2f   : > { %s1614_s4 = scalar_lea.hbm %s2048_s0, %s1215_s28  ;;  %s152_s22 = scalar_lea.vmem [#allocation2], %s1154_s29 }
  0x30   : > { %s159_s25 = sshll.u32 %s152_s22, 4  ;;  %p1616_p11 = pnand %p1255_p6, %p36_p8  ;;  %s1620_s25 = int_to_ptr.vmem [resolvable:$true] %s159_s25 }
  0x31   : > { %s1622_s5 = scalar_lea.sflag [#allocation3], %s148_s27  ;;  %s1382_s6 = scalar_lea.hbm %s1614_s4, 4096 }
  0x32   : > { %p1383_p13 = scmp.ne.s32.totalorder %s1614_s4, %s1382_s6  ;;  %p1384_p0 = pneg %p1616_p11 }
  0x33   : > { %s1387_s9 = scalar_lea.hbm %s2048_s0, 8192  ;;  %p1388_p7 = scmp.lt.u32.totalorder %s1614_s4, %s2048_s0 }
  0x34   : > { %p1385_p3 = pnand %p1384_p0, %p1383_p13  ;;  %p1389_p9 = scmp.lt.u32.totalorder %s1387_s9, %s1382_s6 }
  0x35   : > { %p1391_p1 = scmp.lt.u32.totalorder %s1382_s6, %s1614_s4 }
  0x36   : > { %p1386_p5 = pneg %p1385_p3  ;;  %p1390_p2 = por %p1389_p9, %p1388_p7 }
  0x38   : > { %p1392_p4 = por %p1391_p1, %p1390_p2 }
  0x3a   : > { %p1393_p6 = pnand %p1392_p4, %p1386_p5 }
  0x3c   : > { %1396 = shalt.err (!%p1393_p6)
}
  0x3d   : > { %s1397_s27 = scalar_lea.vmem %s1620_s25, 4096  ;;  %s1487_s28 = smov [#allocation2]  }
  0x3e   : > { %p1398_p8 = scmp.ne.s32.totalorder %s1620_s25, %s1397_s27  ;;  %s1402_s29 = sshll.u32 %s1487_s28, 4  ;;  %s1403_s29 = int_to_ptr.vmem [resolvable:$false] %s1402_s29 }
  0x3f   : > { %s1404_s23 = scalar_lea.vmem %s1403_s29, 8192  ;;  %p1405_p3 = scmp.lt.s32.totalorder %s1620_s25, %s1403_s29 }
  0x40   : > { %p1400_p10 = pnand %p1398_p8, %p1384_p0  ;;  %p1406_p7 = scmp.lt.s32.totalorder %s1404_s23, %s1397_s27 }
  0x42   : > { %p1401_p13 = pneg %p1400_p10  ;;  %p1407_p9 = por %p1406_p7, %p1405_p3 }
  0x44   : > { %p1408_p2 = pnand %p1407_p9, %p1401_p13 }
  0x46   : > { %1411 = shalt.err (!%p1408_p2)
}
  0x47   : > { %s1488_s30 = smov 64   ;;  %s1489_s22 = smov 4  }
  0x48   : > { %1249 = dma.hbm_to_vmem [thread:$0]  (!%p1616_p11), %s1614_s4, 4096, %s1620_s25, %s1622_s5, %s1488_s30, %s1488_s30, %s1489_s22  }
  0x49   : > { %p2062_p0 = scmp.ne.s32.totalorder %s2057_s20, 0 }
  0x4a   : > { %s1653_s6 = sand.u32 (!%p2062_p0), 1, %s1474_s13   ;;  %p2063_p5 = scmp.ne.s32.totalorder (!%p2062_p0), %s2055_s18, 0 }
  0x4b   : > { %171 = sbr.rel (%p2062_p0) target bundleno = 472 (0x1d8), region = 32  ;;  %s1158_s7 = sshll.u32 (!%p2062_p0), %s1653_s6, 8 }
  0x4c   : > { %s174_s8 = scalar_lea.sflag (!%p2062_p0), [#allocation3], %s1653_s6  ;;  %s1657_s9 = scalar_lea.vmem (!%p2062_p0), [#allocation2], %s1158_s7 }
  0x52   : > { %1457 = dma.done.wait (%p2063_p5), %s174_s8, 4096  }
  0x53   : > { %1459 = vsyncadd (%p2063_p5), %s174_s8, 4294963200  ;;  %p2064_p11 = scmp.eq.s32.totalorder %s1535_s16, 0 }
  0x55   : > { %1461 = dma.done.wait (%p2064_p11), [#allocation6], 2048   ;;  %p2065_p1 = pmov %p2064_p11 }
  0x56   : > { %v1490_v0 = vmov 0   ;;  %v1298_v1 = vld [vmem:[#allocation5 + $0x4] ss:$8 sps:$4 sm:$0xff]   ;;  %v1300_v2 = vld [vmem:[#allocation5] ss:$8 sps:$4 sm:$0xff]   ;;  %v1326_v21 = vld [vmem:[%s1657_s9 + $0x10] sm:$0xff]   ;;  %v289_v49 = vlaneseq }
  0x57   : > { %1463 = vsyncadd (%p2065_p1), [#allocation6], 4294965248  ;;  %603 = vmatprep.mubr.bf16.mxu0 %v1490_v0  ;;  %763 = vmatprep.mubr.bf16.mxu1 %v1490_v0  ;;  %v1301_v3 = vld [vmem:[#allocation5 + $0x14] ss:$8 sps:$4 sm:$0xff]   ;;  %v1303_v4 = vld [vmem:[#allocation5 + $0x10] ss:$8 sps:$4 sm:$0xff]  }
  0x58   : > { %571 = vmatprep.subr.bf16.mxu0 %v1298_v1  ;;  %1218 = vmatprep.subr.bf16.mxu1 %v1298_v1  ;;  %v1304_v5 = vld [vmem:[#allocation5 + $0x24] ss:$8 sps:$4 sm:$0xff]   ;;  %v1306_v6 = vld [vmem:[#allocation5 + $0x20] ss:$8 sps:$4 sm:$0xff]   ;;  %v1307_v7 = vld [vmem:[#allocation5 + $0x34] ss:$8 sps:$4 sm:$0xff]  }
  0x59   : > { %572 = vmatpush1.bf16.msra.mxu0 %v1300_v2  ;;  %1226 = vmatpush1.bf16.msra.mxu1 %v1300_v2  ;;  %v1309_v8 = vld [vmem:[#allocation5 + $0x30] ss:$8 sps:$4 sm:$0xff]   ;;  %v1310_v9 = vld [vmem:[#allocation5 + $0x44] ss:$8 sps:$4 sm:$0xff]   ;;  %v1312_v10 = vld [vmem:[#allocation5 + $0x40] ss:$8 sps:$4 sm:$0xff]  }
  0x5a   : > { %573 = vmatprep.subr.bf16.mxu0 %v1301_v3  ;;  %1219 = vmatprep.subr.bf16.mxu1 %v1301_v3  ;;  %v1313_v11 = vld [vmem:[#allocation5 + $0x54] ss:$8 sps:$4 sm:$0xff]   ;;  %v1315_v12 = vld [vmem:[#allocation5 + $0x50] ss:$8 sps:$4 sm:$0xff]   ;;  %v1316_v13 = vld [vmem:[#allocation5 + $0x64] ss:$8 sps:$4 sm:$0xff]  }
  0x5b   : > { %v1318_v14 = vld [vmem:[#allocation5 + $0x60] ss:$8 sps:$4 sm:$0xff]   ;;  %v1319_v15 = vld [vmem:[#allocation5 + $0x74] ss:$8 sps:$4 sm:$0xff]   ;;  %v1321_v16 = vld [vmem:[#allocation5 + $0x70] ss:$8 sps:$4 sm:$0xff]  }
  0x5c   : > { %v1322_v17 = vld [vmem:[%s1657_s9] sm:$0xff]   ;;  %v1324_v19 = vld [vmem:[%s1657_s9 + $0x8] sm:$0xff]   ;;  %v1327_v22 = vld [vmem:[%s1657_s9 + $0x90] sm:$0xff]   ;;  %v290_v50 = vshrl.u32 %v289_v49, 7  ;;  %s1160_s4 = sshll.u32 %s1653_s6, 10  ;;  %s1217_s26 = sshll.u32 %s1535_s16, 14 }
  0x5d   : > { %574 = vmatpush1.bf16.msra.mxu0 %v1303_v4  ;;  %1227 = vmatpush1.bf16.msra.mxu1 %v1303_v4  ;;  %v1323_v18 = vld [vmem:[%s1657_s9 + $0x80] sm:$0xff]   ;;  %v1325_v20 = vld [vmem:[%s1657_s9 + $0x88] sm:$0xff]   ;;  %v1328_v23 = vld [vmem:[%s1657_s9 + $0x18] sm:$0xff]   ;;  %s1743_s25 = scalar_lea.vmem [#allocation7], %s1160_s4  ;;  %s1994_s11 = scalar_lea.hbm %s2051_s3, %s1217_s26 }
  0x5e   : > { %575 = vmatprep.subr.bf16.mxu0 %v1304_v5  ;;  %1220 = vmatprep.subr.bf16.mxu1 %v1304_v5  ;;  %v1329_v24 = vld [vmem:[%s1657_s9 + $0x98] sm:$0xff]   ;;  %v1330_v25 = vld [vmem:[%s1657_s9 + $0x20] sm:$0xff]   ;;  %v1332_v27 = vld [vmem:[%s1657_s9 + $0x28] sm:$0xff]   ;;  %v291_v51 = vsub.s32 0, %v290_v50  ;;  %v295_v53 = vsub.s32 1, %v290_v50  ;;  %s1067_s5 = sshll.u32 %s1743_s25, 4  ;;  %s1996_s5 = int_to_ptr.vmem [resolvable:$true] %s1067_s5 }
  0x5f   : > { %v1331_v26 = vld [vmem:[%s1657_s9 + $0xa0] sm:$0xff]   ;;  %v1333_v28 = vld [vmem:[%s1657_s9 + $0xa8] sm:$0xff]   ;;  %v1334_v29 = vld [vmem:[%s1657_s9 + $0x30] sm:$0xff]   ;;  %s1053_s27 = scalar_lea.sflag [#allocation4], %s1653_s6  ;;  %s1412_s28 = scalar_lea.vmem %s1996_s5, 16384 }
  0x60   : > { %v1335_v30 = vld [vmem:[%s1657_s9 + $0xb0] sm:$0xff]   ;;  %v1336_v31 = vld [vmem:[%s1657_s9 + $0x38] sm:$0xff]   ;;  %v1338_v33 = vld [vmem:[%s1657_s9 + $0x40] sm:$0xff]   ;;  %p1413_p4 = scmp.ne.s32.totalorder %s1996_s5, %s1412_s28  ;;  %s1491_s29 = smov [#allocation7]  }
  0x61   : > { %576 = vmatpush1.bf16.msra.mxu0 %v1306_v6  ;;  %1228 = vmatpush1.bf16.msra.mxu1 %v1306_v6  ;;  %v1337_v32 = vld [vmem:[%s1657_s9 + $0xb8] sm:$0xff]   ;;  %v1339_v34 = vld [vmem:[%s1657_s9 + $0xc0] sm:$0xff]   ;;  %v1340_v35 = vld [vmem:[%s1657_s9 + $0x48] sm:$0xff]   ;;  %s1416_s23 = sshll.u32 %s1491_s29, 4  ;;  %s1417_s23 = int_to_ptr.vmem [resolvable:$false] %s1416_s23 }
  0x62   : > { %577 = vmatprep.subr.bf16.mxu0 %v1307_v7  ;;  %1221 = vmatprep.subr.bf16.mxu1 %v1307_v7  ;;  %v1341_v36 = vld [vmem:[%s1657_s9 + $0xc8] sm:$0xff]   ;;  %v1342_v37 = vld [vmem:[%s1657_s9 + $0x50] sm:$0xff]   ;;  %v1344_v39 = vld [vmem:[%s1657_s9 + $0x58] sm:$0xff]   ;;  %p1414_p6 = pnand %p1413_p4, %p1605_p12  ;;  %s1418_s30 = scalar_lea.vmem %s1417_s23, 32768 }
  0x63   : > { %v1343_v38 = vld [vmem:[%s1657_s9 + $0xd0] sm:$0xff]   ;;  %v1345_v40 = vld [vmem:[%s1657_s9 + $0xd8] sm:$0xff]   ;;  %v1346_v41 = vld [vmem:[%s1657_s9 + $0x60] sm:$0xff]   ;;  %p1419_p10 = scmp.lt.s32.totalorder %s1996_s5, %s1417_s23  ;;  %p1420_p13 = scmp.lt.s32.totalorder %s1418_s30, %s1412_s28 }
  0x64   : > { %v1347_v42 = vld [vmem:[%s1657_s9 + $0xe0] sm:$0xff]   ;;  %v1348_v43 = vld [vmem:[%s1657_s9 + $0x68] sm:$0xff]   ;;  %v1350_v45 = vld [vmem:[%s1657_s9 + $0x70] sm:$0xff]   ;;  %p1415_p8 = pneg %p1414_p6 }
  0x65   : > { %578 = vmatpush1.bf16.msra.mxu0 %v1309_v8  ;;  %1229 = vmatpush1.bf16.msra.mxu1 %v1309_v8  ;;  %v1349_v44 = vld [vmem:[%s1657_s9 + $0xe8] sm:$0xff]   ;;  %v1351_v46 = vld [vmem:[%s1657_s9 + $0xf0] sm:$0xff]   ;;  %v1352_v47 = vld [vmem:[%s1657_s9 + $0x78] sm:$0xff]   ;;  %p1421_p3 = por %p1420_p13, %p1419_p10 }
  0x66   : > { %579 = vmatprep.subr.bf16.mxu0 %v1310_v9  ;;  %1222 = vmatprep.subr.bf16.mxu1 %v1310_v9  ;;  %v1353_v48 = vld [vmem:[%s1657_s9 + $0xf8] sm:$0xff]   ;;  %v287_v52 = vld [vmem:[%s2050_s2] sm:$0x3] }
  0x67   : > { %v1735_v54 = vrot.slane %v287_v52, %v291_v51  ;;  %v1737_v55 = vrot.slane %v287_v52, %v295_v53  ;;  %p1422_p7 = pnand %p1421_p3, %p1415_p8 }
  0x69   : > { %580 = vmatpush1.bf16.msra.mxu0 %v1312_v10  ;;  %1230 = vmatpush1.bf16.msra.mxu1 %v1312_v10 }
  0x6a   : > { %581 = vmatprep.subr.bf16.mxu0 %v1313_v11  ;;  %1223 = vmatprep.subr.bf16.mxu1 %v1313_v11 }
  0x6d   : > { %582 = vmatpush1.bf16.msra.mxu0 %v1315_v12  ;;  %1231 = vmatpush1.bf16.msra.mxu1 %v1315_v12 }
  0x6e   : > { %583 = vmatprep.subr.bf16.mxu0 %v1316_v13  ;;  %1224 = vmatprep.subr.bf16.mxu1 %v1316_v13 }
  0x71   : > { %584 = vmatpush1.bf16.msra.mxu0 %v1318_v14  ;;  %1232 = vmatpush1.bf16.msra.mxu1 %v1318_v14 }
  0x72   : > { %585 = vmatprep.subr.bf16.mxu0 %v1319_v15  ;;  %1225 = vmatprep.subr.bf16.mxu1 %v1319_v15 }
  0x75   : > { %586 = vmatpush1.bf16.msra.mxu0 %v1321_v16  ;;  %1233 = vmatpush1.bf16.msra.mxu1 %v1321_v16 }
  0x78   : > { %604 = vmatmul.mubr.bf16.vlgmr.msra.gmra.mrb[0].mxu0 %v1322_v17  ;;  %764 = vmatmul.mubr.bf16.vlgmr.msra.gmra.mrb[0].mxu1 %v1323_v18 }
  0x79   : > { %613 = vmatprep.mubr.bf16.mxu0 %v1490_v0  ;;  %773 = vmatprep.mubr.bf16.mxu1 %v1490_v0 }
  0x80   : > { %614 = vmatmul.mubr.bf16.gmra.mrb[4].mxu0 %v1324_v19  ;;  %774 = vmatmul.mubr.bf16.gmra.mrb[4].mxu1 %v1325_v20 }
  0x81   : > { %623 = vmatprep.mubr.bf16.mxu0 %v1490_v0  ;;  %783 = vmatprep.mubr.bf16.mxu1 %v1490_v0 }
  0x88   : > { %624 = vmatmul.mubr.bf16.gmra.mrb[8].mxu0 %v1326_v21  ;;  %784 = vmatmul.mubr.bf16.gmra.mrb[8].mxu1 %v1327_v22 }
  0x89   : > { %633 = vmatprep.mubr.bf16.mxu0 %v1490_v0  ;;  %793 = vmatprep.mubr.bf16.mxu1 %v1490_v0 }
  0x90   : > { %634 = vmatmul.mubr.bf16.gmra.mrb[12].mxu0 %v1328_v23  ;;  %794 = vmatmul.mubr.bf16.gmra.mrb[12].mxu1 %v1329_v24 }
  0x91   : > { %643 = vmatprep.mubr.bf16.mxu0 %v1490_v0  ;;  %803 = vmatprep.mubr.bf16.mxu1 %v1490_v0 }
  0x98   : > { %644 = vmatmul.mubr.bf16.gmra.mrb[16].mxu0 %v1330_v25  ;;  %804 = vmatmul.mubr.bf16.gmra.mrb[16].mxu1 %v1331_v26 }
  0x99   : > { %653 = vmatprep.mubr.bf16.mxu0 %v1490_v0  ;;  %813 = vmatprep.mubr.bf16.mxu1 %v1490_v0 }
  0xa0   : > { %654 = vmatmul.mubr.bf16.gmra.mrb[20].mxu0 %v1332_v27  ;;  %814 = vmatmul.mubr.bf16.gmra.mrb[20].mxu1 %v1333_v28 }
  0xa1   : > { %663 = vmatprep.mubr.bf16.mxu0 %v1490_v0  ;;  %823 = vmatprep.mubr.bf16.mxu1 %v1490_v0 }
  0xa8   : > { %664 = vmatmul.mubr.bf16.gmra.mrb[24].mxu0 %v1334_v29  ;;  %824 = vmatmul.mubr.bf16.gmra.mrb[24].mxu1 %v1335_v30 }
  0xa9   : > { %673 = vmatprep.mubr.bf16.mxu0 %v1490_v0  ;;  %833 = vmatprep.mubr.bf16.mxu1 %v1490_v0 }
  0xb0   : > { %674 = vmatmul.mubr.bf16.gmra.mrb[28].mxu0 %v1336_v31  ;;  %834 = vmatmul.mubr.bf16.gmra.mrb[28].mxu1 %v1337_v32 }
  0xb1   : > { %683 = vmatprep.mubr.bf16.mxu0 %v1490_v0  ;;  %843 = vmatprep.mubr.bf16.mxu1 %v1490_v0 }
  0xb8   : > { %684 = vmatmul.mubr.bf16.gmra.mrb[32].mxu0 %v1338_v33  ;;  %844 = vmatmul.mubr.bf16.gmra.mrb[32].mxu1 %v1339_v34 }
  0xb9   : > { %693 = vmatprep.mubr.bf16.mxu0 %v1490_v0  ;;  %853 = vmatprep.mubr.bf16.mxu1 %v1490_v0 }
  0xc0   : > { %694 = vmatmul.mubr.bf16.gmra.mrb[36].mxu0 %v1340_v35  ;;  %854 = vmatmul.mubr.bf16.gmra.mrb[36].mxu1 %v1341_v36 }
  0xc1   : > { %703 = vmatprep.mubr.bf16.mxu0 %v1490_v0  ;;  %863 = vmatprep.mubr.bf16.mxu1 %v1490_v0 }
  0xc8   : > { %704 = vmatmul.mubr.bf16.gmra.mrb[40].mxu0 %v1342_v37  ;;  %864 = vmatmul.mubr.bf16.gmra.mrb[40].mxu1 %v1343_v38 }
  0xc9   : > { %713 = vmatprep.mubr.bf16.mxu0 %v1490_v0  ;;  %873 = vmatprep.mubr.bf16.mxu1 %v1490_v0 }
  0xd0   : > { %714 = vmatmul.mubr.bf16.gmra.mrb[44].mxu0 %v1344_v39  ;;  %874 = vmatmul.mubr.bf16.gmra.mrb[44].mxu1 %v1345_v40 }
  0xd1   : > { %723 = vmatprep.mubr.bf16.mxu0 %v1490_v0  ;;  %883 = vmatprep.mubr.bf16.mxu1 %v1490_v0 }
  0xd8   : > { %724 = vmatmul.mubr.bf16.gmra.mrb[48].mxu0 %v1346_v41  ;;  %884 = vmatmul.mubr.bf16.gmra.mrb[48].mxu1 %v1347_v42 }
  0xd9   : > { %733 = vmatprep.mubr.bf16.mxu0 %v1490_v0  ;;  %893 = vmatprep.mubr.bf16.mxu1 %v1490_v0 }
  0xe0   : > { %734 = vmatmul.mubr.bf16.gmra.mrb[52].mxu0 %v1348_v43  ;;  %894 = vmatmul.mubr.bf16.gmra.mrb[52].mxu1 %v1349_v44 }
  0xe1   : > { %743 = vmatprep.mubr.bf16.mxu0 %v1490_v0  ;;  %903 = vmatprep.mubr.bf16.mxu1 %v1490_v0 }
  0xe8   : > { %744 = vmatmul.mubr.bf16.gmra.mrb[56].mxu0 %v1350_v45  ;;  %904 = vmatmul.mubr.bf16.gmra.mrb[56].mxu1 %v1351_v46 }
  0xe9   : > { %753 = vmatprep.mubr.bf16.mxu0 %v1490_v0  ;;  %913 = vmatprep.mubr.bf16.mxu1 %v1490_v0 }
  0xf0   : > { %754 = vmatmul.mubr.bf16.gmra.mrb[60].mxu0 %v1352_v47  ;;  %914 = vmatmul.mubr.bf16.gmra.mrb[60].mxu1 %v1353_v48 }
 0x14b   : > { %v605_v56 = vpop.f32.mrb[0].mxu0  ;;  %v765_v57 = vpop.f32.mrb[0].mxu1 }
 0x14c   : > { %v606_v58 = vadd.f32 %v605_v56, %v1735_v54  ;;  %v766_v59 = vadd.f32 %v765_v57, %v1735_v54  ;;  %v607_v60 = vpop.f32.mrb[1].mxu0  ;;  %v767_v61 = vpop.f32.mrb[1].mxu1 }
 0x14d   : > { %v608_v62 = vadd.f32 %v607_v60, %v1737_v55  ;;  %v768_v63 = vadd.f32 %v767_v61, %v1737_v55  ;;  %v609_v0 = vpop.f32.mrb[2].mxu0  ;;  %v769_v1 = vpop.f32.mrb[2].mxu1 }
 0x14e   : > { %924 = vst [vmem:[%s1743_s25] sm:$0xff] %v606_v58  ;;  %988 = vst [vmem:[%s1743_s25 + $0x200] sm:$0xff] %v766_v59  ;;  %v610_v2 = vadd.f32 %v609_v0, %v1735_v54  ;;  %v770_v3 = vadd.f32 %v769_v1, %v1735_v54  ;;  %v611_v4 = vpop.f32.mrb[3].mxu0  ;;  %v771_v5 = vpop.f32.mrb[3].mxu1 }
 0x14f   : > { %925 = vst [vmem:[%s1743_s25 + $0x8] sm:$0xff] %v608_v62  ;;  %989 = vst [vmem:[%s1743_s25 + $0x208] sm:$0xff] %v768_v63  ;;  %v612_v6 = vadd.f32 %v611_v4, %v1737_v55  ;;  %v772_v7 = vadd.f32 %v771_v5, %v1737_v55 }
 0x150   : > { %926 = vst [vmem:[%s1743_s25 + $0x10] sm:$0xff] %v610_v2  ;;  %990 = vst [vmem:[%s1743_s25 + $0x210] sm:$0xff] %v770_v3 }
 0x151   : > { %927 = vst [vmem:[%s1743_s25 + $0x18] sm:$0xff] %v612_v6  ;;  %991 = vst [vmem:[%s1743_s25 + $0x218] sm:$0xff] %v772_v7 }
 0x153   : > { %v615_v8 = vpop.f32.mrb[4].mxu0  ;;  %v775_v9 = vpop.f32.mrb[4].mxu1 }
 0x154   : > { %v616_v10 = vadd.f32 %v615_v8, %v1735_v54  ;;  %v776_v11 = vadd.f32 %v775_v9, %v1735_v54  ;;  %v617_v12 = vpop.f32.mrb[5].mxu0  ;;  %v777_v13 = vpop.f32.mrb[5].mxu1 }
 0x155   : > { %v618_v14 = vadd.f32 %v617_v12, %v1737_v55  ;;  %v778_v15 = vadd.f32 %v777_v13, %v1737_v55  ;;  %v619_v16 = vpop.f32.mrb[6].mxu0  ;;  %v779_v17 = vpop.f32.mrb[6].mxu1 }
 0x156   : > { %928 = vst [vmem:[%s1743_s25 + $0x20] sm:$0xff] %v616_v10  ;;  %992 = vst [vmem:[%s1743_s25 + $0x220] sm:$0xff] %v776_v11  ;;  %v620_v18 = vadd.f32 %v619_v16, %v1735_v54  ;;  %v780_v19 = vadd.f32 %v779_v17, %v1735_v54  ;;  %v621_v20 = vpop.f32.mrb[7].mxu0  ;;  %v781_v21 = vpop.f32.mrb[7].mxu1 }
 0x157   : > { %929 = vst [vmem:[%s1743_s25 + $0x28] sm:$0xff] %v618_v14  ;;  %993 = vst [vmem:[%s1743_s25 + $0x228] sm:$0xff] %v778_v15  ;;  %v622_v22 = vadd.f32 %v621_v20, %v1737_v55  ;;  %v782_v23 = vadd.f32 %v781_v21, %v1737_v55 }
 0x158   : > { %930 = vst [vmem:[%s1743_s25 + $0x30] sm:$0xff] %v620_v18  ;;  %994 = vst [vmem:[%s1743_s25 + $0x230] sm:$0xff] %v780_v19 }
 0x159   : > { %931 = vst [vmem:[%s1743_s25 + $0x38] sm:$0xff] %v622_v22  ;;  %995 = vst [vmem:[%s1743_s25 + $0x238] sm:$0xff] %v782_v23 }
 0x15b   : > { %v625_v24 = vpop.f32.mrb[8].mxu0  ;;  %v785_v25 = vpop.f32.mrb[8].mxu1 }
 0x15c   : > { %v626_v26 = vadd.f32 %v625_v24, %v1735_v54  ;;  %v786_v27 = vadd.f32 %v785_v25, %v1735_v54  ;;  %v627_v28 = vpop.f32.mrb[9].mxu0  ;;  %v787_v29 = vpop.f32.mrb[9].mxu1 }
 0x15d   : > { %v628_v30 = vadd.f32 %v627_v28, %v1737_v55  ;;  %v788_v31 = vadd.f32 %v787_v29, %v1737_v55  ;;  %v629_v32 = vpop.f32.mrb[10].mxu0  ;;  %v789_v33 = vpop.f32.mrb[10].mxu1 }
 0x15e   : > { %932 = vst [vmem:[%s1743_s25 + $0x40] sm:$0xff] %v626_v26  ;;  %996 = vst [vmem:[%s1743_s25 + $0x240] sm:$0xff] %v786_v27  ;;  %v630_v34 = vadd.f32 %v629_v32, %v1735_v54  ;;  %v790_v35 = vadd.f32 %v789_v33, %v1735_v54  ;;  %v631_v36 = vpop.f32.mrb[11].mxu0  ;;  %v791_v37 = vpop.f32.mrb[11].mxu1 }
 0x15f   : > { %933 = vst [vmem:[%s1743_s25 + $0x48] sm:$0xff] %v628_v30  ;;  %997 = vst [vmem:[%s1743_s25 + $0x248] sm:$0xff] %v788_v31  ;;  %v632_v38 = vadd.f32 %v631_v36, %v1737_v55  ;;  %v792_v39 = vadd.f32 %v791_v37, %v1737_v55 }
 0x160   : > { %934 = vst [vmem:[%s1743_s25 + $0x50] sm:$0xff] %v630_v34  ;;  %998 = vst [vmem:[%s1743_s25 + $0x250] sm:$0xff] %v790_v35 }
 0x161   : > { %935 = vst [vmem:[%s1743_s25 + $0x58] sm:$0xff] %v632_v38  ;;  %999 = vst [vmem:[%s1743_s25 + $0x258] sm:$0xff] %v792_v39 }
 0x163   : > { %v635_v40 = vpop.f32.mrb[12].mxu0  ;;  %v795_v41 = vpop.f32.mrb[12].mxu1 }
 0x164   : > { %v636_v42 = vadd.f32 %v635_v40, %v1735_v54  ;;  %v796_v43 = vadd.f32 %v795_v41, %v1735_v54  ;;  %v637_v44 = vpop.f32.mrb[13].mxu0  ;;  %v797_v45 = vpop.f32.mrb[13].mxu1 }
 0x165   : > { %v638_v46 = vadd.f32 %v637_v44, %v1737_v55  ;;  %v798_v47 = vadd.f32 %v797_v45, %v1737_v55  ;;  %v639_v48 = vpop.f32.mrb[14].mxu0  ;;  %v799_v49 = vpop.f32.mrb[14].mxu1 }
 0x166   : > { %936 = vst [vmem:[%s1743_s25 + $0x60] sm:$0xff] %v636_v42  ;;  %1000 = vst [vmem:[%s1743_s25 + $0x260] sm:$0xff] %v796_v43  ;;  %v640_v50 = vadd.f32 %v639_v48, %v1735_v54  ;;  %v800_v51 = vadd.f32 %v799_v49, %v1735_v54  ;;  %v641_v52 = vpop.f32.mrb[15].mxu0  ;;  %v801_v53 = vpop.f32.mrb[15].mxu1 }
 0x167   : > { %937 = vst [vmem:[%s1743_s25 + $0x68] sm:$0xff] %v638_v46  ;;  %1001 = vst [vmem:[%s1743_s25 + $0x268] sm:$0xff] %v798_v47  ;;  %v642_v56 = vadd.f32 %v641_v52, %v1737_v55  ;;  %v802_v57 = vadd.f32 %v801_v53, %v1737_v55 }
 0x168   : > { %938 = vst [vmem:[%s1743_s25 + $0x70] sm:$0xff] %v640_v50  ;;  %1002 = vst [vmem:[%s1743_s25 + $0x270] sm:$0xff] %v800_v51 }
 0x169   : > { %939 = vst [vmem:[%s1743_s25 + $0x78] sm:$0xff] %v642_v56  ;;  %1003 = vst [vmem:[%s1743_s25 + $0x278] sm:$0xff] %v802_v57 }
 0x16b   : > { %v645_v58 = vpop.f32.mrb[16].mxu0  ;;  %v805_v59 = vpop.f32.mrb[16].mxu1 }
 0x16c   : > { %v646_v60 = vadd.f32 %v645_v58, %v1735_v54  ;;  %v806_v61 = vadd.f32 %v805_v59, %v1735_v54  ;;  %v647_v62 = vpop.f32.mrb[17].mxu0  ;;  %v807_v63 = vpop.f32.mrb[17].mxu1 }
 0x16d   : > { %v648_v0 = vadd.f32 %v647_v62, %v1737_v55  ;;  %v808_v1 = vadd.f32 %v807_v63, %v1737_v55  ;;  %v649_v2 = vpop.f32.mrb[18].mxu0  ;;  %v809_v3 = vpop.f32.mrb[18].mxu1 }
 0x16e   : > { %940 = vst [vmem:[%s1743_s25 + $0x80] sm:$0xff] %v646_v60  ;;  %1004 = vst [vmem:[%s1743_s25 + $0x280] sm:$0xff] %v806_v61  ;;  %v650_v4 = vadd.f32 %v649_v2, %v1735_v54  ;;  %v810_v5 = vadd.f32 %v809_v3, %v1735_v54  ;;  %v651_v6 = vpop.f32.mrb[19].mxu0  ;;  %v811_v7 = vpop.f32.mrb[19].mxu1 }
 0x16f   : > { %941 = vst [vmem:[%s1743_s25 + $0x88] sm:$0xff] %v648_v0  ;;  %1005 = vst [vmem:[%s1743_s25 + $0x288] sm:$0xff] %v808_v1  ;;  %v652_v8 = vadd.f32 %v651_v6, %v1737_v55  ;;  %v812_v9 = vadd.f32 %v811_v7, %v1737_v55 }
 0x170   : > { %942 = vst [vmem:[%s1743_s25 + $0x90] sm:$0xff] %v650_v4  ;;  %1006 = vst [vmem:[%s1743_s25 + $0x290] sm:$0xff] %v810_v5 }
 0x171   : > { %943 = vst [vmem:[%s1743_s25 + $0x98] sm:$0xff] %v652_v8  ;;  %1007 = vst [vmem:[%s1743_s25 + $0x298] sm:$0xff] %v812_v9 }
 0x173   : > { %v655_v10 = vpop.f32.mrb[20].mxu0  ;;  %v815_v11 = vpop.f32.mrb[20].mxu1 }
 0x174   : > { %v656_v12 = vadd.f32 %v655_v10, %v1735_v54  ;;  %v816_v13 = vadd.f32 %v815_v11, %v1735_v54  ;;  %v657_v14 = vpop.f32.mrb[21].mxu0  ;;  %v817_v15 = vpop.f32.mrb[21].mxu1 }
 0x175   : > { %v658_v16 = vadd.f32 %v657_v14, %v1737_v55  ;;  %v818_v17 = vadd.f32 %v817_v15, %v1737_v55  ;;  %v659_v18 = vpop.f32.mrb[22].mxu0  ;;  %v819_v19 = vpop.f32.mrb[22].mxu1 }
 0x176   : > { %944 = vst [vmem:[%s1743_s25 + $0xa0] sm:$0xff] %v656_v12  ;;  %1008 = vst [vmem:[%s1743_s25 + $0x2a0] sm:$0xff] %v816_v13  ;;  %v660_v20 = vadd.f32 %v659_v18, %v1735_v54  ;;  %v820_v21 = vadd.f32 %v819_v19, %v1735_v54  ;;  %v661_v22 = vpop.f32.mrb[23].mxu0  ;;  %v821_v23 = vpop.f32.mrb[23].mxu1 }
 0x177   : > { %945 = vst [vmem:[%s1743_s25 + $0xa8] sm:$0xff] %v658_v16  ;;  %1009 = vst [vmem:[%s1743_s25 + $0x2a8] sm:$0xff] %v818_v17  ;;  %v662_v24 = vadd.f32 %v661_v22, %v1737_v55  ;;  %v822_v25 = vadd.f32 %v821_v23, %v1737_v55 }
 0x178   : > { %946 = vst [vmem:[%s1743_s25 + $0xb0] sm:$0xff] %v660_v20  ;;  %1010 = vst [vmem:[%s1743_s25 + $0x2b0] sm:$0xff] %v820_v21 }
 0x179   : > { %947 = vst [vmem:[%s1743_s25 + $0xb8] sm:$0xff] %v662_v24  ;;  %1011 = vst [vmem:[%s1743_s25 + $0x2b8] sm:$0xff] %v822_v25 }
 0x17b   : > { %v665_v26 = vpop.f32.mrb[24].mxu0  ;;  %v825_v27 = vpop.f32.mrb[24].mxu1 }
 0x17c   : > { %v666_v28 = vadd.f32 %v665_v26, %v1735_v54  ;;  %v826_v29 = vadd.f32 %v825_v27, %v1735_v54  ;;  %v667_v30 = vpop.f32.mrb[25].mxu0  ;;  %v827_v31 = vpop.f32.mrb[25].mxu1 }
 0x17d   : > { %v668_v32 = vadd.f32 %v667_v30, %v1737_v55  ;;  %v828_v33 = vadd.f32 %v827_v31, %v1737_v55  ;;  %v669_v34 = vpop.f32.mrb[26].mxu0  ;;  %v829_v35 = vpop.f32.mrb[26].mxu1 }
 0x17e   : > { %948 = vst [vmem:[%s1743_s25 + $0xc0] sm:$0xff] %v666_v28  ;;  %1012 = vst [vmem:[%s1743_s25 + $0x2c0] sm:$0xff] %v826_v29  ;;  %v670_v36 = vadd.f32 %v669_v34, %v1735_v54  ;;  %v830_v37 = vadd.f32 %v829_v35, %v1735_v54  ;;  %v671_v38 = vpop.f32.mrb[27].mxu0  ;;  %v831_v39 = vpop.f32.mrb[27].mxu1 }
 0x17f   : > { %949 = vst [vmem:[%s1743_s25 + $0xc8] sm:$0xff] %v668_v32  ;;  %1013 = vst [vmem:[%s1743_s25 + $0x2c8] sm:$0xff] %v828_v33  ;;  %v672_v40 = vadd.f32 %v671_v38, %v1737_v55  ;;  %v832_v41 = vadd.f32 %v831_v39, %v1737_v55 }
 0x180   : > { %950 = vst [vmem:[%s1743_s25 + $0xd0] sm:$0xff] %v670_v36  ;;  %1014 = vst [vmem:[%s1743_s25 + $0x2d0] sm:$0xff] %v830_v37 }
 0x181   : > { %951 = vst [vmem:[%s1743_s25 + $0xd8] sm:$0xff] %v672_v40  ;;  %1015 = vst [vmem:[%s1743_s25 + $0x2d8] sm:$0xff] %v832_v41 }
 0x183   : > { %v675_v42 = vpop.f32.mrb[28].mxu0  ;;  %v835_v43 = vpop.f32.mrb[28].mxu1 }
 0x184   : > { %v676_v44 = vadd.f32 %v675_v42, %v1735_v54  ;;  %v836_v45 = vadd.f32 %v835_v43, %v1735_v54  ;;  %v677_v46 = vpop.f32.mrb[29].mxu0  ;;  %v837_v47 = vpop.f32.mrb[29].mxu1 }
 0x185   : > { %v678_v48 = vadd.f32 %v677_v46, %v1737_v55  ;;  %v838_v49 = vadd.f32 %v837_v47, %v1737_v55  ;;  %v679_v50 = vpop.f32.mrb[30].mxu0  ;;  %v839_v51 = vpop.f32.mrb[30].mxu1 }
 0x186   : > { %952 = vst [vmem:[%s1743_s25 + $0xe0] sm:$0xff] %v676_v44  ;;  %1016 = vst [vmem:[%s1743_s25 + $0x2e0] sm:$0xff] %v836_v45  ;;  %v680_v52 = vadd.f32 %v679_v50, %v1735_v54  ;;  %v840_v53 = vadd.f32 %v839_v51, %v1735_v54  ;;  %v681_v56 = vpop.f32.mrb[31].mxu0  ;;  %v841_v57 = vpop.f32.mrb[31].mxu1 }
 0x187   : > { %953 = vst [vmem:[%s1743_s25 + $0xe8] sm:$0xff] %v678_v48  ;;  %1017 = vst [vmem:[%s1743_s25 + $0x2e8] sm:$0xff] %v838_v49  ;;  %v682_v58 = vadd.f32 %v681_v56, %v1737_v55  ;;  %v842_v59 = vadd.f32 %v841_v57, %v1737_v55 }
 0x188   : > { %954 = vst [vmem:[%s1743_s25 + $0xf0] sm:$0xff] %v680_v52  ;;  %1018 = vst [vmem:[%s1743_s25 + $0x2f0] sm:$0xff] %v840_v53 }
 0x189   : > { %955 = vst [vmem:[%s1743_s25 + $0xf8] sm:$0xff] %v682_v58  ;;  %1019 = vst [vmem:[%s1743_s25 + $0x2f8] sm:$0xff] %v842_v59 }
 0x18b   : > { %v685_v60 = vpop.f32.mrb[32].mxu0  ;;  %v845_v61 = vpop.f32.mrb[32].mxu1 }
 0x18c   : > { %v686_v62 = vadd.f32 %v685_v60, %v1735_v54  ;;  %v846_v63 = vadd.f32 %v845_v61, %v1735_v54  ;;  %v687_v0 = vpop.f32.mrb[33].mxu0  ;;  %v847_v1 = vpop.f32.mrb[33].mxu1 }
 0x18d   : > { %v688_v2 = vadd.f32 %v687_v0, %v1737_v55  ;;  %v848_v3 = vadd.f32 %v847_v1, %v1737_v55  ;;  %v689_v4 = vpop.f32.mrb[34].mxu0  ;;  %v849_v5 = vpop.f32.mrb[34].mxu1 }
 0x18e   : > { %956 = vst [vmem:[%s1743_s25 + $0x100] sm:$0xff] %v686_v62  ;;  %1020 = vst [vmem:[%s1743_s25 + $0x300] sm:$0xff] %v846_v63  ;;  %v690_v6 = vadd.f32 %v689_v4, %v1735_v54  ;;  %v850_v7 = vadd.f32 %v849_v5, %v1735_v54  ;;  %v691_v8 = vpop.f32.mrb[35].mxu0  ;;  %v851_v9 = vpop.f32.mrb[35].mxu1 }
 0x18f   : > { %957 = vst [vmem:[%s1743_s25 + $0x108] sm:$0xff] %v688_v2  ;;  %1021 = vst [vmem:[%s1743_s25 + $0x308] sm:$0xff] %v848_v3  ;;  %v692_v10 = vadd.f32 %v691_v8, %v1737_v55  ;;  %v852_v11 = vadd.f32 %v851_v9, %v1737_v55 }
 0x190   : > { %958 = vst [vmem:[%s1743_s25 + $0x110] sm:$0xff] %v690_v6  ;;  %1022 = vst [vmem:[%s1743_s25 + $0x310] sm:$0xff] %v850_v7 }
 0x191   : > { %959 = vst [vmem:[%s1743_s25 + $0x118] sm:$0xff] %v692_v10  ;;  %1023 = vst [vmem:[%s1743_s25 + $0x318] sm:$0xff] %v852_v11 }
 0x193   : > { %v695_v12 = vpop.f32.mrb[36].mxu0  ;;  %v855_v13 = vpop.f32.mrb[36].mxu1 }
 0x194   : > { %v696_v14 = vadd.f32 %v695_v12, %v1735_v54  ;;  %v856_v15 = vadd.f32 %v855_v13, %v1735_v54  ;;  %v697_v16 = vpop.f32.mrb[37].mxu0  ;;  %v857_v17 = vpop.f32.mrb[37].mxu1 }
 0x195   : > { %v698_v18 = vadd.f32 %v697_v16, %v1737_v55  ;;  %v858_v19 = vadd.f32 %v857_v17, %v1737_v55  ;;  %v699_v20 = vpop.f32.mrb[38].mxu0  ;;  %v859_v21 = vpop.f32.mrb[38].mxu1 }
 0x196   : > { %960 = vst [vmem:[%s1743_s25 + $0x120] sm:$0xff] %v696_v14  ;;  %1024 = vst [vmem:[%s1743_s25 + $0x320] sm:$0xff] %v856_v15  ;;  %v700_v22 = vadd.f32 %v699_v20, %v1735_v54  ;;  %v860_v23 = vadd.f32 %v859_v21, %v1735_v54  ;;  %v701_v24 = vpop.f32.mrb[39].mxu0  ;;  %v861_v25 = vpop.f32.mrb[39].mxu1 }
 0x197   : > { %961 = vst [vmem:[%s1743_s25 + $0x128] sm:$0xff] %v698_v18  ;;  %1025 = vst [vmem:[%s1743_s25 + $0x328] sm:$0xff] %v858_v19  ;;  %v702_v26 = vadd.f32 %v701_v24, %v1737_v55  ;;  %v862_v27 = vadd.f32 %v861_v25, %v1737_v55 }
 0x198   : > { %962 = vst [vmem:[%s1743_s25 + $0x130] sm:$0xff] %v700_v22  ;;  %1026 = vst [vmem:[%s1743_s25 + $0x330] sm:$0xff] %v860_v23 }
 0x199   : > { %963 = vst [vmem:[%s1743_s25 + $0x138] sm:$0xff] %v702_v26  ;;  %1027 = vst [vmem:[%s1743_s25 + $0x338] sm:$0xff] %v862_v27 }
 0x19b   : > { %v705_v28 = vpop.f32.mrb[40].mxu0  ;;  %v865_v29 = vpop.f32.mrb[40].mxu1 }
 0x19c   : > { %v706_v30 = vadd.f32 %v705_v28, %v1735_v54  ;;  %v866_v31 = vadd.f32 %v865_v29, %v1735_v54  ;;  %v707_v32 = vpop.f32.mrb[41].mxu0  ;;  %v867_v33 = vpop.f32.mrb[41].mxu1 }
 0x19d   : > { %v708_v34 = vadd.f32 %v707_v32, %v1737_v55  ;;  %v868_v35 = vadd.f32 %v867_v33, %v1737_v55  ;;  %v709_v36 = vpop.f32.mrb[42].mxu0  ;;  %v869_v37 = vpop.f32.mrb[42].mxu1 }
 0x19e   : > { %964 = vst [vmem:[%s1743_s25 + $0x140] sm:$0xff] %v706_v30  ;;  %1028 = vst [vmem:[%s1743_s25 + $0x340] sm:$0xff] %v866_v31  ;;  %v710_v38 = vadd.f32 %v709_v36, %v1735_v54  ;;  %v870_v39 = vadd.f32 %v869_v37, %v1735_v54  ;;  %v711_v40 = vpop.f32.mrb[43].mxu0  ;;  %v871_v41 = vpop.f32.mrb[43].mxu1 }
 0x19f   : > { %965 = vst [vmem:[%s1743_s25 + $0x148] sm:$0xff] %v708_v34  ;;  %1029 = vst [vmem:[%s1743_s25 + $0x348] sm:$0xff] %v868_v35  ;;  %v712_v42 = vadd.f32 %v711_v40, %v1737_v55  ;;  %v872_v43 = vadd.f32 %v871_v41, %v1737_v55 }
 0x1a0   : > { %966 = vst [vmem:[%s1743_s25 + $0x150] sm:$0xff] %v710_v38  ;;  %1030 = vst [vmem:[%s1743_s25 + $0x350] sm:$0xff] %v870_v39 }
 0x1a1   : > { %967 = vst [vmem:[%s1743_s25 + $0x158] sm:$0xff] %v712_v42  ;;  %1031 = vst [vmem:[%s1743_s25 + $0x358] sm:$0xff] %v872_v43 }
 0x1a3   : > { %v715_v44 = vpop.f32.mrb[44].mxu0  ;;  %v875_v45 = vpop.f32.mrb[44].mxu1 }
 0x1a4   : > { %v716_v46 = vadd.f32 %v715_v44, %v1735_v54  ;;  %v876_v47 = vadd.f32 %v875_v45, %v1735_v54  ;;  %v717_v48 = vpop.f32.mrb[45].mxu0  ;;  %v877_v49 = vpop.f32.mrb[45].mxu1 }
 0x1a5   : > { %v718_v50 = vadd.f32 %v717_v48, %v1737_v55  ;;  %v878_v51 = vadd.f32 %v877_v49, %v1737_v55  ;;  %v719_v52 = vpop.f32.mrb[46].mxu0  ;;  %v879_v53 = vpop.f32.mrb[46].mxu1 }
 0x1a6   : > { %968 = vst [vmem:[%s1743_s25 + $0x160] sm:$0xff] %v716_v46  ;;  %1032 = vst [vmem:[%s1743_s25 + $0x360] sm:$0xff] %v876_v47  ;;  %v720_v56 = vadd.f32 %v719_v52, %v1735_v54  ;;  %v880_v57 = vadd.f32 %v879_v53, %v1735_v54  ;;  %v721_v58 = vpop.f32.mrb[47].mxu0  ;;  %v881_v59 = vpop.f32.mrb[47].mxu1 }
 0x1a7   : > { %969 = vst [vmem:[%s1743_s25 + $0x168] sm:$0xff] %v718_v50  ;;  %1033 = vst [vmem:[%s1743_s25 + $0x368] sm:$0xff] %v878_v51  ;;  %v722_v60 = vadd.f32 %v721_v58, %v1737_v55  ;;  %v882_v61 = vadd.f32 %v881_v59, %v1737_v55 }
 0x1a8   : > { %970 = vst [vmem:[%s1743_s25 + $0x170] sm:$0xff] %v720_v56  ;;  %1034 = vst [vmem:[%s1743_s25 + $0x370] sm:$0xff] %v880_v57 }
 0x1a9   : > { %971 = vst [vmem:[%s1743_s25 + $0x178] sm:$0xff] %v722_v60  ;;  %1035 = vst [vmem:[%s1743_s25 + $0x378] sm:$0xff] %v882_v61 }
 0x1ab   : > { %v725_v62 = vpop.f32.mrb[48].mxu0  ;;  %v885_v63 = vpop.f32.mrb[48].mxu1 }
 0x1ac   : > { %v726_v0 = vadd.f32 %v725_v62, %v1735_v54  ;;  %v886_v1 = vadd.f32 %v885_v63, %v1735_v54  ;;  %v727_v2 = vpop.f32.mrb[49].mxu0  ;;  %v887_v3 = vpop.f32.mrb[49].mxu1 }
 0x1ad   : > { %v728_v4 = vadd.f32 %v727_v2, %v1737_v55  ;;  %v888_v5 = vadd.f32 %v887_v3, %v1737_v55  ;;  %v729_v6 = vpop.f32.mrb[50].mxu0  ;;  %v889_v7 = vpop.f32.mrb[50].mxu1 }
 0x1ae   : > { %972 = vst [vmem:[%s1743_s25 + $0x180] sm:$0xff] %v726_v0  ;;  %1036 = vst [vmem:[%s1743_s25 + $0x380] sm:$0xff] %v886_v1  ;;  %v730_v8 = vadd.f32 %v729_v6, %v1735_v54  ;;  %v890_v9 = vadd.f32 %v889_v7, %v1735_v54  ;;  %v731_v10 = vpop.f32.mrb[51].mxu0  ;;  %v891_v11 = vpop.f32.mrb[51].mxu1 }
 0x1af   : > { %973 = vst [vmem:[%s1743_s25 + $0x188] sm:$0xff] %v728_v4  ;;  %1037 = vst [vmem:[%s1743_s25 + $0x388] sm:$0xff] %v888_v5  ;;  %v732_v12 = vadd.f32 %v731_v10, %v1737_v55  ;;  %v892_v13 = vadd.f32 %v891_v11, %v1737_v55 }
 0x1b0   : > { %974 = vst [vmem:[%s1743_s25 + $0x190] sm:$0xff] %v730_v8  ;;  %1038 = vst [vmem:[%s1743_s25 + $0x390] sm:$0xff] %v890_v9 }
 0x1b1   : > { %975 = vst [vmem:[%s1743_s25 + $0x198] sm:$0xff] %v732_v12  ;;  %1039 = vst [vmem:[%s1743_s25 + $0x398] sm:$0xff] %v892_v13 }
 0x1b3   : > { %v735_v14 = vpop.f32.mrb[52].mxu0  ;;  %v895_v15 = vpop.f32.mrb[52].mxu1 }
 0x1b4   : > { %v736_v16 = vadd.f32 %v735_v14, %v1735_v54  ;;  %v896_v17 = vadd.f32 %v895_v15, %v1735_v54  ;;  %v737_v18 = vpop.f32.mrb[53].mxu0  ;;  %v897_v19 = vpop.f32.mrb[53].mxu1 }
 0x1b5   : > { %v738_v20 = vadd.f32 %v737_v18, %v1737_v55  ;;  %v898_v21 = vadd.f32 %v897_v19, %v1737_v55  ;;  %v739_v22 = vpop.f32.mrb[54].mxu0  ;;  %v899_v23 = vpop.f32.mrb[54].mxu1 }
 0x1b6   : > { %976 = vst [vmem:[%s1743_s25 + $0x1a0] sm:$0xff] %v736_v16  ;;  %1040 = vst [vmem:[%s1743_s25 + $0x3a0] sm:$0xff] %v896_v17  ;;  %v740_v24 = vadd.f32 %v739_v22, %v1735_v54  ;;  %v900_v25 = vadd.f32 %v899_v23, %v1735_v54  ;;  %v741_v26 = vpop.f32.mrb[55].mxu0  ;;  %v901_v27 = vpop.f32.mrb[55].mxu1 }
 0x1b7   : > { %977 = vst [vmem:[%s1743_s25 + $0x1a8] sm:$0xff] %v738_v20  ;;  %1041 = vst [vmem:[%s1743_s25 + $0x3a8] sm:$0xff] %v898_v21  ;;  %v742_v28 = vadd.f32 %v741_v26, %v1737_v55  ;;  %v902_v29 = vadd.f32 %v901_v27, %v1737_v55 }
 0x1b8   : > { %978 = vst [vmem:[%s1743_s25 + $0x1b0] sm:$0xff] %v740_v24  ;;  %1042 = vst [vmem:[%s1743_s25 + $0x3b0] sm:$0xff] %v900_v25 }
 0x1b9   : > { %979 = vst [vmem:[%s1743_s25 + $0x1b8] sm:$0xff] %v742_v28  ;;  %1043 = vst [vmem:[%s1743_s25 + $0x3b8] sm:$0xff] %v902_v29 }
 0x1bb   : > { %v745_v30 = vpop.f32.mrb[56].mxu0  ;;  %v905_v31 = vpop.f32.mrb[56].mxu1 }
 0x1bc   : > { %v746_v32 = vadd.f32 %v745_v30, %v1735_v54  ;;  %v906_v33 = vadd.f32 %v905_v31, %v1735_v54  ;;  %v747_v34 = vpop.f32.mrb[57].mxu0  ;;  %v907_v35 = vpop.f32.mrb[57].mxu1 }
 0x1bd   : > { %v748_v36 = vadd.f32 %v747_v34, %v1737_v55  ;;  %v908_v37 = vadd.f32 %v907_v35, %v1737_v55  ;;  %v749_v38 = vpop.f32.mrb[58].mxu0  ;;  %v909_v39 = vpop.f32.mrb[58].mxu1 }
 0x1be   : > { %980 = vst [vmem:[%s1743_s25 + $0x1c0] sm:$0xff] %v746_v32  ;;  %1044 = vst [vmem:[%s1743_s25 + $0x3c0] sm:$0xff] %v906_v33  ;;  %v750_v40 = vadd.f32 %v749_v38, %v1735_v54  ;;  %v910_v41 = vadd.f32 %v909_v39, %v1735_v54  ;;  %v751_v42 = vpop.f32.mrb[59].mxu0  ;;  %v911_v43 = vpop.f32.mrb[59].mxu1 }
 0x1bf   : > { %981 = vst [vmem:[%s1743_s25 + $0x1c8] sm:$0xff] %v748_v36  ;;  %1045 = vst [vmem:[%s1743_s25 + $0x3c8] sm:$0xff] %v908_v37  ;;  %v752_v44 = vadd.f32 %v751_v42, %v1737_v55  ;;  %v912_v45 = vadd.f32 %v911_v43, %v1737_v55 }
 0x1c0   : > { %982 = vst [vmem:[%s1743_s25 + $0x1d0] sm:$0xff] %v750_v40  ;;  %1046 = vst [vmem:[%s1743_s25 + $0x3d0] sm:$0xff] %v910_v41 }
 0x1c1   : > { %983 = vst [vmem:[%s1743_s25 + $0x1d8] sm:$0xff] %v752_v44  ;;  %1047 = vst [vmem:[%s1743_s25 + $0x3d8] sm:$0xff] %v912_v45 }
 0x1c3   : > { %v755_v46 = vpop.f32.mrb[60].mxu0  ;;  %v915_v47 = vpop.f32.mrb[60].mxu1 }
 0x1c4   : > { %v756_v48 = vadd.f32 %v755_v46, %v1735_v54  ;;  %v916_v49 = vadd.f32 %v915_v47, %v1735_v54  ;;  %v757_v50 = vpop.f32.mrb[61].mxu0  ;;  %v917_v51 = vpop.f32.mrb[61].mxu1 }
 0x1c5   : > { %v758_v52 = vadd.f32 %v757_v50, %v1737_v55  ;;  %v918_v53 = vadd.f32 %v917_v51, %v1737_v55  ;;  %v759_v56 = vpop.f32.mrb[62].mxu0  ;;  %v919_v57 = vpop.f32.mrb[62].mxu1 }
 0x1c6   : > { %984 = vst [vmem:[%s1743_s25 + $0x1e0] sm:$0xff] %v756_v48  ;;  %1048 = vst [vmem:[%s1743_s25 + $0x3e0] sm:$0xff] %v916_v49  ;;  %v760_v58 = vadd.f32 %v759_v56, %v1735_v54  ;;  %v920_v59 = vadd.f32 %v919_v57, %v1735_v54  ;;  %v761_v60 = vpop.f32.mrb[63].mxu0  ;;  %v921_v61 = vpop.f32.mrb[63].mxu1 }
 0x1c7   : > { %985 = vst [vmem:[%s1743_s25 + $0x1e8] sm:$0xff] %v758_v52  ;;  %1049 = vst [vmem:[%s1743_s25 + $0x3e8] sm:$0xff] %v918_v53  ;;  %v762_v62 = vadd.f32 %v761_v60, %v1737_v55  ;;  %v922_v63 = vadd.f32 %v921_v61, %v1737_v55 }
 0x1c8   : > { %986 = vst [vmem:[%s1743_s25 + $0x1f0] sm:$0xff] %v760_v58  ;;  %1050 = vst [vmem:[%s1743_s25 + $0x3f0] sm:$0xff] %v920_v59 }
 0x1c9   : > { %987 = vst [vmem:[%s1743_s25 + $0x1f8] sm:$0xff] %v762_v62  ;;  %1051 = vst [vmem:[%s1743_s25 + $0x3f8] sm:$0xff] %v922_v63 }
 0x1ca   : > { %1425 = shalt.err (!%p1422_p7)
}
 0x1cb   : > { %s1426_s22 = scalar_lea.hbm %s1994_s11, 16384  ;;  %s1430_s9 = scalar_lea.hbm %s2051_s3, 32768 }
 0x1cc   : > { %p1427_p9 = scmp.ne.s32.totalorder %s1994_s11, %s1426_s22  ;;  %p1431_p5 = scmp.lt.u32.totalorder %s1994_s11, %s2051_s3 }
 0x1cd   : > { %p1432_p11 = scmp.lt.u32.totalorder %s1430_s9, %s1426_s22  ;;  %p1434_p4 = scmp.lt.u32.totalorder %s1426_s22, %s1994_s11 }
 0x1ce   : > { %p1428_p2 = pnand %p1427_p9, %p1605_p12 }
 0x1cf   : > { %p1433_p1 = por %p1432_p11, %p1431_p5 }
 0x1d0   : > { %p1429_p0 = pneg %p1428_p2 }
 0x1d1   : > { %p1435_p6 = por %p1434_p4, %p1433_p1 }
 0x1d3   : > { %p1436_p8 = pnand %p1435_p6, %p1429_p0 }
 0x1d5   : > { %1439 = shalt.err (!%p1436_p8)
}
 0x1d6   : > { %s1492_s4 = smov 256   ;;  %s1493_s25 = smov 16  }
 0x1d7   : > { %1240 = dma.vmem_to_hbm [thread:$0]  (%p1605_p12), %s1996_s5, 16384, %s1994_s11, %s1053_s27, %s1492_s4, %s1492_s4, %s1493_s25  }
 0x1d8 PF: > { %s1082_s26 = sand.u32 1, %s1470_s12   ;;  %p2066_p10 = scmp.ne.s32.totalorder %s2056_s19, 0 }
 0x1d9   : > { %p2067_p13 = scmp.ge.s32.totalorder %s1482_s15, 2  ;;  %s1083_s16 = scalar_lea.sflag [#allocation4], %s1082_s26 }
 0x1db   : > { %p1251_p3 = pnand %p2067_p13, %p2066_p10 }
 0x1dd   : > { %1465 = dma.done.wait (!%p1251_p3), %s1083_s16, 16384  }
 0x1de   : > { %1467 = vsyncadd (!%p1251_p3), %s1083_s16, 4294950912  ;;  %p17_p7 = scmp.ge.s32.totalorder %s1570_s24, 4   ;;  %s2068_s12 = smov %s1474_s13 }
 0x1df   : > { %s2069_s13 = smov %s1478_s14  ;;  %s2070_s14 = smov %s1601_s17 }
 0x1e0   : > { %s2071_s15 = smov %s1570_s24  ;;  %19 = sbr.rel (!%p17_p7) target bundleno = 6 (0x6), region = 81 }
 0x1e7   :  { %1088 = vsyncpa [#allocation3], 1 }
 0x1e8   :  { %1090 = vsyncpa [#allocation3 + $0x1], 1 }
 0x1e9   :  { %1091 = vsyncpa [#allocation6], 1 }
 0x1ea   :  { %1092 = vsyncpa [#allocation4], 1 }
 0x1eb   :  { %1094 = vsyncpa [#allocation4 + $0x1], 1 }

</bundles_post_ra>
